<compile_context>
chip_gen: v7x
topology: tpu7x:2x2x1
jax: 0.10.0
libtpu: 0.0.40
codegen_flags: <defaults>
</compile_context>

<pallas_src>
import jax
import jax.numpy as jnp
from jax import lax
from jax.experimental import pallas as pl
from jax.experimental.pallas import tpu as pltpu

THRESH = 0.5   # LIF firing threshold (Vth)
DECAY  = 0.2   # LIF membrane decay (tau)
EPS    = 1e-5  # batch-norm epsilon


def _deep_transition_kernel(x_ref, ahat_t_ref, w_ref, scale_ref, shift_ref, bias_ref,
                            out_ref, u_scr, o_scr, h0_scr, h1_scr):
    """One time-block per grid step: EBNorm affine -> LIF -> fused, reassociated TAGConv.

    Shapes (channels on sublanes, nodes on lanes):
      x_ref      [Tb, Cin, N]     time block of input
      ahat_t_ref [N, N]           A_hat^T (resident across grid)
      w_ref      [2*Cout, Cin]    [w0^T ; w1^T]
      scale_ref  [Cin, 1]         THRESH*gamma*inv_std
      shift_ref  [Cin, 1]         beta - THRESH*gamma*inv_std*mean
      bias_ref   [Cout, 1]        TAGConv bias
      out_ref    [Tb*Cout, N]     lane-dense output slab for this time block
      u_scr/o_scr [Cin, N]        persistent LIF state (membrane / previous spikes)
      h0_scr/h1_scr [Tb*Cout, N]  staged hop-0 (+bias) and hop-1 projections
    """
    tb = pl.program_id(0)

    @pl.when(tb == 0)
    def _():
        u_scr[...] = jnp.zeros_like(u_scr)
        o_scr[...] = jnp.zeros_like(o_scr)

    Tb, Cin, N = x_ref.shape
    Cout = bias_ref.shape[0]

    # Hoisted broadcasts (JAX does not CSE broadcast_in_dim inside loops).
    scale_b = jnp.broadcast_to(scale_ref[...], (Cin, N))
    shift_b = jnp.broadcast_to(shift_ref[...], (Cin, N))
    bias_b  = jnp.broadcast_to(bias_ref[...], (Cout, N))
    w = w_ref[...]                                                  # [2*Cout, Cin]

    def step(t, carry):
        u, o = carry
        # ---- EBNorm affine (stats folded into scale/shift) ----
        xn = scale_b * x_ref[t] + shift_b                           # [Cin, N]
        # ---- LIF membrane update + Heaviside spike (forward) ----
        u = DECAY * u * (1.0 - o) + xn
        o = (u > THRESH).astype(jnp.float32)
        # ---- channel projection BEFORE aggregation (cheap MXU dot) ----
        p = jnp.dot(w, o, preferred_element_type=jnp.float32)       # [2*Cout, N]
        row = pl.multiple_of(t * Cout, Cout)
        h0_scr[pl.ds(row, Cout), :] = p[:Cout, :] + bias_b          # hop-0 term + bias
        h1_scr[pl.ds(row, Cout), :] = p[Cout:, :]                   # hop-1 projection
        return u, o

    u_f, o_f = lax.fori_loop(0, Tb, step, (u_scr[...], o_scr[...]), unroll=True)
    u_scr[...] = u_f                                                # carry LIF state to
    o_scr[...] = o_f                                                # the next time block

    # ---- batched graph aggregation: ONE dot [Tb*Cout, N] @ [N, N] per block ----
    agg = jnp.dot(h1_scr[...].astype(ahat_t_ref.dtype), ahat_t_ref[...],
                  preferred_element_type=jnp.float32)               # [Tb*Cout, N]
    out_ref[...] = (h0_scr[...] + agg).astype(out_ref.dtype)


def deep_transition_pallas(x_nct, a_hat, gamma, beta, w0, w1, bias,
                           *, use_bf16_ahat=False, time_block=None):
    """x_nct: [N, Cin, T] (PyTorch layout).  Returns [N, Cout, T]."""
    N, Cin, T = x_nct.shape
    Cout = w0.shape[1]

    # Time-block size: collapse the grid entirely for small T, otherwise the largest
    # divisor of T that is <= 16 (LIF state is carried across blocks in VMEM scratch).
    if time_block is not None:
        Tb = time_block
    elif T <= 16:
        Tb = T
    else:
        Tb = next((c for c in range(16, 0, -1) if T % c == 0), T)
    assert T % Tb == 0, (T, Tb)

    x_f32 = x_nct.astype(jnp.float32)

    # ---- EBNorm stats on the original layout (no extra transpose pass), folded into
    #      per-channel scale/shift ----
    mean = jnp.mean(x_f32, axis=(0, 2))                                       # [Cin]
    var  = jnp.mean(jnp.square(x_f32 - mean[None, :, None]), axis=(0, 2))     # [Cin]
    inv_std = lax.rsqrt(var + EPS)
    g = gamma.reshape(Cin)
    b = beta.reshape(Cin)
    scale_c = (THRESH * g * inv_std).reshape(Cin, 1)
    shift_c = (b - THRESH * g * inv_std * mean).reshape(Cin, 1)

    # time-major, channels on sublanes, nodes on lanes
    x_tcn = jnp.transpose(x_f32, (2, 1, 0))                                   # [T, Cin, N]

    ahat_t = jnp.asarray(a_hat, jnp.float32).T                                # [N, N]
    if use_bf16_ahat:
        # lossless for the 0/1 spike path; ~1e-3 rounding on A_hat (loosen the check)
        ahat_t = ahat_t.astype(jnp.bfloat16)
    w_cat = jnp.concatenate([w0.T, w1.T], axis=0).astype(jnp.float32)         # [2*Cout, Cin]
    bias_c = bias.reshape(Cout, 1).astype(jnp.float32)

    out_flat = pl.pallas_call(
        _deep_transition_kernel,
        out_shape=jax.ShapeDtypeStruct((T * Cout, N), jnp.float32),
        grid=(T // Tb,),
        in_specs=[
            pl.BlockSpec((Tb, Cin, N),   lambda tb: (tb, 0, 0)),  # streamed per block
            pl.BlockSpec((N, N),         lambda tb: (0, 0)),      # resident A_hat^T
            pl.BlockSpec((2 * Cout, Cin), lambda tb: (0, 0)),     # resident weights
            pl.BlockSpec((Cin, 1),       lambda tb: (0, 0)),      # scale  (broadcast in-kernel)
            pl.BlockSpec((Cin, 1),       lambda tb: (0, 0)),      # shift
            pl.BlockSpec((Cout, 1),      lambda tb: (0, 0)),      # bias
        ],
        out_specs=pl.BlockSpec((Tb * Cout, N), lambda tb: (tb, 0)),
        scratch_shapes=[
            pltpu.VMEM((Cin, N), jnp.float32),        # membrane potential u
            pltpu.VMEM((Cin, N), jnp.float32),        # previous spikes o
            pltpu.VMEM((Tb * Cout, N), jnp.float32),  # hop-0 (+bias) rows for the block
            pltpu.VMEM((Tb * Cout, N), jnp.float32),  # hop-1 projection rows for the block
        ],
        compiler_params=pltpu.CompilerParams(
            dimension_semantics=("arbitrary",)),       # serial LIF recurrence over time
    )(x_tcn, ahat_t, w_cat, scale_c, shift_c, bias_c)

    out_tcn = out_flat.reshape(T, Cout, N)
    # TODO(synk): downstream consumers could take [T, Cout, N] directly to skip this pass.
    return jnp.transpose(out_tcn, (2, 1, 0))                                  # [N, Cout, T]


# ----------------------------- glue (plain JAX) -------------------------------------

def gcn_norm_dense(edge_index, num_nodes):
    """Dense D^{-1/2} A D^{-1/2} (TAGConv default: normalize=True, no self loops)."""
    src, dst = edge_index
    A = jnp.zeros((num_nodes, num_nodes), jnp.float32).at[dst, src].add(1.0)
    deg = jnp.sum(A, axis=1)
    d_inv_sqrt = jnp.where(deg > 0, lax.rsqrt(jnp.maximum(deg, 1e-12)), 0.0)
    return d_inv_sqrt[:, None] * A * d_inv_sqrt[None, :]


def reference(x_nct, a_hat, gamma, beta, w0, w1, bias):
    """Pure-JAX reference with the original module semantics (correctness check)."""
    x = jnp.transpose(x_nct, (2, 0, 1)).astype(jnp.float32)                   # [T, N, Cin]
    T, N, Cin = x.shape
    mean = jnp.mean(x, axis=(0, 1), keepdims=True)
    var  = jnp.mean(jnp.square(x - mean), axis=(0, 1), keepdims=True)
    xn = THRESH * gamma.reshape(1, 1, Cin) * (x - mean) * lax.rsqrt(var + EPS) \
         + beta.reshape(1, 1, Cin)
    u = jnp.zeros((N, Cin), jnp.float32)
    o = jnp.zeros((N, Cin), jnp.float32)
    outs = []
    for t in range(T):
        u = DECAY * u * (1.0 - o) + xn[t]
        o = (u > THRESH).astype(jnp.float32)
        outs.append(o @ w0 + (a_hat @ o) @ w1 + bias)
    return jnp.transpose(jnp.stack(outs, axis=0), (1, 2, 0))                  # [N, Cout, T]


if __name__ == "__main__":
    N, Cin, Cout, T = 128, 8, 4, 8     # N on the lane axis (multiple of 128)

    key = jax.random.PRNGKey(0)
    kx, kg, kb, kw0, kw1, kbias = jax.random.split(key, 6)

    # input in the PyTorch layout [nodes, channels, time]
    x = jax.random.normal(kx, (N, Cin, T), jnp.float32)

    # undirected ring graph: edge_index [2, 2N]
    src = jnp.arange(N, dtype=jnp.int32)
    dst = (src + 1) % N
    edge_index = jnp.stack([jnp.concatenate([src, dst]),
                            jnp.concatenate([dst, src])], axis=0)

    # deterministic synthetic parameters
    gamma = 1.0 + 0.1 * jax.random.normal(kg, (1, Cin), jnp.float32)   # EBNorm gamma
    beta  = 0.1 * jax.random.normal(kb, (1, Cin), jnp.float32)         # EBNorm beta
    w0    = 0.2 * jax.random.normal(kw0, (Cin, Cout), jnp.float32)     # TAGConv hop-0
    w1    = 0.2 * jax.random.normal(kw1, (Cin, Cout), jnp.float32)     # TAGConv hop-1
    bias  = 0.05 * jax.random.normal(kbias, (1, Cout), jnp.float32)    # TAGConv bias

    a_hat = gcn_norm_dense(edge_index, N)

    out = deep_transition_pallas(x, a_hat, gamma, beta, w0, w1, bias)
    out = jax.block_until_ready(out)

    ref = reference(x, a_hat, gamma, beta, w0, w1, bias)
    assert out.shape == (N, Cout, T), out.shape
    assert float(jnp.max(jnp.abs(out - ref))) < 1e-4

    print("KERNEL_OK")
</pallas_src>

<mosaic_0001>
module attributes {stable_mosaic.version = 11 : i64} {
  func.func @_deep_transition_kernel(%arg0: i32, %arg1: memref<8x8x128xf32, #tpu.memory_space<vmem>>, %arg2: memref<128x128xf32, #tpu.memory_space<vmem>>, %arg3: memref<8x8xf32, #tpu.memory_space<vmem>>, %arg4: memref<8x1xf32, #tpu.memory_space<vmem>>, %arg5: memref<8x1xf32, #tpu.memory_space<vmem>>, %arg6: memref<4x1xf32, #tpu.memory_space<vmem>>, %arg7: memref<32x128xf32, #tpu.memory_space<vmem>>, %arg8: memref<8x128xf32, #tpu.memory_space<vmem>>, %arg9: memref<8x128xf32, #tpu.memory_space<vmem>>, %arg10: memref<32x128xf32, #tpu.memory_space<vmem>>, %arg11: memref<32x128xf32, #tpu.memory_space<vmem>>) attributes {dimension_semantics = [#tpu.dimension_semantics<arbitrary>], iteration_bounds = array<i64: 1>, scalar_prefetch = 0 : i64, scratch_operands = 4 : i64, tpu.core_type = #tpu.core_type<tc>, window_params = [{transform_indices = @transform_0, window_bounds = array<i64: 8, 8, 128>}, {pipeline_mode = #tpu.pipeline_mode<synchronous>, transform_indices = @transform_1, window_bounds = array<i64: 128, 128>}, {pipeline_mode = #tpu.pipeline_mode<synchronous>, transform_indices = @transform_2, window_bounds = array<i64: 8, 8>}, {pipeline_mode = #tpu.pipeline_mode<synchronous>, transform_indices = @transform_3, window_bounds = array<i64: 8, 1>}, {pipeline_mode = #tpu.pipeline_mode<synchronous>, transform_indices = @transform_4, window_bounds = array<i64: 8, 1>}, {pipeline_mode = #tpu.pipeline_mode<synchronous>, transform_indices = @transform_5, window_bounds = array<i64: 4, 1>}, {transform_indices = @transform_6, window_bounds = array<i64: 32, 128>}]} {
    %c0_i32 = arith.constant 0 : i32
    %0 = arith.cmpi eq, %arg0, %c0_i32 : i32
    %1 = arith.extui %0 : i1 to i32
    %c0_i32_0 = arith.constant 0 : i32
    %2 = arith.cmpi ne, %1, %c0_i32_0 : i32
    scf.if %2 {
      %cst_97 = arith.constant 0.000000e+00 : f32
      %223 = vector.broadcast %cst_97 : f32 to vector<8x128xf32>
      %c0_98 = arith.constant 0 : index
      %c0_99 = arith.constant 0 : index
      %224 = vector.load %arg8[%c0_98, %c0_99] : memref<8x128xf32, #tpu.memory_space<vmem>>, vector<8x128xf32>
      tpu.vector_store %arg8[%c0_98, %c0_99], %223 {strides = array<i32>} : memref<8x128xf32, #tpu.memory_space<vmem>>, vector<8x128xf32>,
      %cst_100 = arith.constant 0.000000e+00 : f32
      %225 = vector.broadcast %cst_100 : f32 to vector<8x128xf32>
      %c0_101 = arith.constant 0 : index
      %c0_102 = arith.constant 0 : index
      %226 = vector.load %arg9[%c0_101, %c0_102] : memref<8x128xf32, #tpu.memory_space<vmem>>, vector<8x128xf32>
      tpu.vector_store %arg9[%c0_101, %c0_102], %225 {strides = array<i32>} : memref<8x128xf32, #tpu.memory_space<vmem>>, vector<8x128xf32>,
    } else {
    }
    %c0 = arith.constant 0 : index
    %c0_1 = arith.constant 0 : index
    %3 = vector.load %arg4[%c0, %c0_1] : memref<8x1xf32, #tpu.memory_space<vmem>>, vector<8x1xf32>
    %4 = vector.shape_cast %3 : vector<8x1xf32> to vector<8x1xf32>
    %5 = vector.broadcast %4 : vector<8x1xf32> to vector<8x128xf32>
    %c0_2 = arith.constant 0 : index
    %c0_3 = arith.constant 0 : index
    %6 = vector.load %arg5[%c0_2, %c0_3] : memref<8x1xf32, #tpu.memory_space<vmem>>, vector<8x1xf32>
    %7 = vector.shape_cast %6 : vector<8x1xf32> to vector<8x1xf32>
    %8 = vector.broadcast %7 : vector<8x1xf32> to vector<8x128xf32>
    %c0_4 = arith.constant 0 : index
    %c0_5 = arith.constant 0 : index
    %9 = vector.load %arg6[%c0_4, %c0_5] : memref<4x1xf32, #tpu.memory_space<vmem>>, vector<4x1xf32>
    %10 = vector.shape_cast %9 : vector<4x1xf32> to vector<4x1xf32>
    %11 = vector.broadcast %10 : vector<4x1xf32> to vector<4x128xf32>
    %c0_6 = arith.constant 0 : index
    %c0_7 = arith.constant 0 : index
    %12 = vector.load %arg3[%c0_6, %c0_7] : memref<8x8xf32, #tpu.memory_space<vmem>>, vector<8x8xf32>
    %c0_8 = arith.constant 0 : index
    %c0_9 = arith.constant 0 : index
    %13 = vector.load %arg8[%c0_8, %c0_9] : memref<8x128xf32, #tpu.memory_space<vmem>>, vector<8x128xf32>
    %c0_10 = arith.constant 0 : index
    %c0_11 = arith.constant 0 : index
    %14 = vector.load %arg9[%c0_10, %c0_11] : memref<8x128xf32, #tpu.memory_space<vmem>>, vector<8x128xf32>
    %c0_i32_12 = arith.constant 0 : i32
    %15 = arith.index_cast %c0_i32_12 : i32 to index
    %c0_13 = arith.constant 0 : index
    %c0_14 = arith.constant 0 : index
    %16 = vector.load %arg1[%15, %c0_13, %c0_14] : memref<8x8x128xf32, #tpu.memory_space<vmem>>, vector<1x8x128xf32>
    %17 = vector.shape_cast %16 : vector<1x8x128xf32> to vector<8x128xf32>
    %18 = arith.mulf %5, %17 : vector<8x128xf32>
    %19 = arith.addf %18, %8 : vector<8x128xf32>
    %cst = arith.constant 2.000000e-01 : f32
    %20 = vector.broadcast %cst : f32 to vector<8x128xf32>
    %21 = arith.mulf %20, %13 : vector<8x128xf32>
    %cst_15 = arith.constant 1.000000e+00 : f32
    %22 = vector.broadcast %cst_15 : f32 to vector<8x128xf32>
    %23 = arith.subf %22, %14 : vector<8x128xf32>
    %24 = arith.mulf %21, %23 : vector<8x128xf32>
    %25 = arith.addf %24, %19 : vector<8x128xf32>
    %cst_16 = arith.constant 5.000000e-01 : f32
    %26 = vector.broadcast %cst_16 : f32 to vector<8x128xf32>
    %27 = arith.cmpf ogt, %25, %26 : vector<8x128xf32>
    %28 = arith.extui %27 : vector<8x128xi1> to vector<8x128xi32>
    %29 = arith.sitofp %28 : vector<8x128xi32> to vector<8x128xf32>
    %cst_17 = arith.constant dense<0.000000e+00> : vector<8x128xf32>
    %30 = tpu.matmul %12, %29, %cst_17 {dimension_numbers = #tpu.dot_dimension_numbers<[1], [0], [0], [1], [0, 0, 1, 1], [], []>} : vector<8x8xf32>, vector<8x128xf32>, vector<8x128xf32> -> vector<8x128xf32>
    %c4_i32 = arith.constant 4 : i32
    %31 = arith.muli %c0_i32_12, %c4_i32 : i32
    %32 = tpu.assume_multiple %31, 4 : i32
    %33 = vector.extract_strided_slice %30 {offsets = [0, 0], sizes = [4, 128], strides = [1, 1]} : vector<8x128xf32> to vector<4x128xf32>
    %34 = arith.addf %33, %11 : vector<4x128xf32>
    %35 = arith.index_cast %32 : i32 to index
    %c0_18 = arith.constant 0 : index
    %36 = vector.load %arg10[%35, %c0_18] : memref<32x128xf32, #tpu.memory_space<vmem>>, vector<4x128xf32>
    tpu.vector_store %arg10[%35, %c0_18], %34 {strides = array<i32>} : memref<32x128xf32, #tpu.memory_space<vmem>>, vector<4x128xf32>,
    %37 = vector.extract_strided_slice %30 {offsets = [4, 0], sizes = [4, 128], strides = [1, 1]} : vector<8x128xf32> to vector<4x128xf32>
    %38 = arith.index_cast %32 : i32 to index
    %c0_19 = arith.constant 0 : index
    %39 = vector.load %arg11[%38, %c0_19] : memref<32x128xf32, #tpu.memory_space<vmem>>, vector<4x128xf32>
    tpu.vector_store %arg11[%38, %c0_19], %37 {strides = array<i32>} : memref<32x128xf32, #tpu.memory_space<vmem>>, vector<4x128xf32>,
    %c1_i32 = arith.constant 1 : i32
    %40 = arith.index_cast %c1_i32 : i32 to index
    %c0_20 = arith.constant 0 : index
    %c0_21 = arith.constant 0 : index
    %41 = vector.load %arg1[%40, %c0_20, %c0_21] : memref<8x8x128xf32, #tpu.memory_space<vmem>>, vector<1x8x128xf32>
    %42 = vector.shape_cast %41 : vector<1x8x128xf32> to vector<8x128xf32>
    %43 = arith.mulf %5, %42 : vector<8x128xf32>
    %44 = arith.addf %43, %8 : vector<8x128xf32>
    %cst_22 = arith.constant 2.000000e-01 : f32
    %45 = vector.broadcast %cst_22 : f32 to vector<8x128xf32>
    %46 = arith.mulf %45, %25 : vector<8x128xf32>
    %cst_23 = arith.constant 1.000000e+00 : f32
    %47 = vector.broadcast %cst_23 : f32 to vector<8x128xf32>
    %48 = arith.subf %47, %29 : vector<8x128xf32>
    %49 = arith.mulf %46, %48 : vector<8x128xf32>
    %50 = arith.addf %49, %44 : vector<8x128xf32>
    %cst_24 = arith.constant 5.000000e-01 : f32
    %51 = vector.broadcast %cst_24 : f32 to vector<8x128xf32>
    %52 = arith.cmpf ogt, %50, %51 : vector<8x128xf32>
    %53 = arith.extui %52 : vector<8x128xi1> to vector<8x128xi32>
    %54 = arith.sitofp %53 : vector<8x128xi32> to vector<8x128xf32>
    %cst_25 = arith.constant dense<0.000000e+00> : vector<8x128xf32>
    %55 = tpu.matmul %12, %54, %cst_25 {dimension_numbers = #tpu.dot_dimension_numbers<[1], [0], [0], [1], [0, 0, 1, 1], [], []>} : vector<8x8xf32>, vector<8x128xf32>, vector<8x128xf32> -> vector<8x128xf32>
    %c4_i32_26 = arith.constant 4 : i32
    %56 = arith.muli %c1_i32, %c4_i32_26 : i32
    %57 = tpu.assume_multiple %56, 4 : i32
    %58 = vector.extract_strided_slice %55 {offsets = [0, 0], sizes = [4, 128], strides = [1, 1]} : vector<8x128xf32> to vector<4x128xf32>
    %59 = arith.addf %58, %11 : vector<4x128xf32>
    %60 = arith.index_cast %57 : i32 to index
    %c0_27 = arith.constant 0 : index
    %61 = vector.load %arg10[%60, %c0_27] : memref<32x128xf32, #tpu.memory_space<vmem>>, vector<4x128xf32>
    tpu.vector_store %arg10[%60, %c0_27], %59 {strides = array<i32>} : memref<32x128xf32, #tpu.memory_space<vmem>>, vector<4x128xf32>,
    %62 = vector.extract_strided_slice %55 {offsets = [4, 0], sizes = [4, 128], strides = [1, 1]} : vector<8x128xf32> to vector<4x128xf32>
    %63 = arith.index_cast %57 : i32 to index
    %c0_28 = arith.constant 0 : index
    %64 = vector.load %arg11[%63, %c0_28] : memref<32x128xf32, #tpu.memory_space<vmem>>, vector<4x128xf32>
    tpu.vector_store %arg11[%63, %c0_28], %62 {strides = array<i32>} : memref<32x128xf32, #tpu.memory_space<vmem>>, vector<4x128xf32>,
    %c2_i32 = arith.constant 2 : i32
    %65 = arith.index_cast %c2_i32 : i32 to index
    %c0_29 = arith.constant 0 : index
    %c0_30 = arith.constant 0 : index
    %66 = vector.load %arg1[%65, %c0_29, %c0_30] : memref<8x8x128xf32, #tpu.memory_space<vmem>>, vector<1x8x128xf32>
    %67 = vector.shape_cast %66 : vector<1x8x128xf32> to vector<8x128xf32>
    %68 = arith.mulf %5, %67 : vector<8x128xf32>
    %69 = arith.addf %68, %8 : vector<8x128xf32>
    %cst_31 = arith.constant 2.000000e-01 : f32
    %70 = vector.broadcast %cst_31 : f32 to vector<8x128xf32>
    %71 = arith.mulf %70, %50 : vector<8x128xf32>
    %cst_32 = arith.constant 1.000000e+00 : f32
    %72 = vector.broadcast %cst_32 : f32 to vector<8x128xf32>
    %73 = arith.subf %72, %54 : vector<8x128xf32>
    %74 = arith.mulf %71, %73 : vector<8x128xf32>
    %75 = arith.addf %74, %69 : vector<8x128xf32>
    %cst_33 = arith.constant 5.000000e-01 : f32
    %76 = vector.broadcast %cst_33 : f32 to vector<8x128xf32>
    %77 = arith.cmpf ogt, %75, %76 : vector<8x128xf32>
    %78 = arith.extui %77 : vector<8x128xi1> to vector<8x128xi32>
    %79 = arith.sitofp %78 : vector<8x128xi32> to vector<8x128xf32>
    %cst_34 = arith.constant dense<0.000000e+00> : vector<8x128xf32>
    %80 = tpu.matmul %12, %79, %cst_34 {dimension_numbers = #tpu.dot_dimension_numbers<[1], [0], [0], [1], [0, 0, 1, 1], [], []>} : vector<8x8xf32>, vector<8x128xf32>, vector<8x128xf32> -> vector<8x128xf32>
    %c4_i32_35 = arith.constant 4 : i32
    %81 = arith.muli %c2_i32, %c4_i32_35 : i32
    %82 = tpu.assume_multiple %81, 4 : i32
    %83 = vector.extract_strided_slice %80 {offsets = [0, 0], sizes = [4, 128], strides = [1, 1]} : vector<8x128xf32> to vector<4x128xf32>
    %84 = arith.addf %83, %11 : vector<4x128xf32>
    %85 = arith.index_cast %82 : i32 to index
    %c0_36 = arith.constant 0 : index
    %86 = vector.load %arg10[%85, %c0_36] : memref<32x128xf32, #tpu.memory_space<vmem>>, vector<4x128xf32>
    tpu.vector_store %arg10[%85, %c0_36], %84 {strides = array<i32>} : memref<32x128xf32, #tpu.memory_space<vmem>>, vector<4x128xf32>,
    %87 = vector.extract_strided_slice %80 {offsets = [4, 0], sizes = [4, 128], strides = [1, 1]} : vector<8x128xf32> to vector<4x128xf32>
    %88 = arith.index_cast %82 : i32 to index
    %c0_37 = arith.constant 0 : index
    %89 = vector.load %arg11[%88, %c0_37] : memref<32x128xf32, #tpu.memory_space<vmem>>, vector<4x128xf32>
    tpu.vector_store %arg11[%88, %c0_37], %87 {strides = array<i32>} : memref<32x128xf32, #tpu.memory_space<vmem>>, vector<4x128xf32>,
    %c3_i32 = arith.constant 3 : i32
    %90 = arith.index_cast %c3_i32 : i32 to index
    %c0_38 = arith.constant 0 : index
    %c0_39 = arith.constant 0 : index
    %91 = vector.load %arg1[%90, %c0_38, %c0_39] : memref<8x8x128xf32, #tpu.memory_space<vmem>>, vector<1x8x128xf32>
    %92 = vector.shape_cast %91 : vector<1x8x128xf32> to vector<8x128xf32>
    %93 = arith.mulf %5, %92 : vector<8x128xf32>
    %94 = arith.addf %93, %8 : vector<8x128xf32>
    %cst_40 = arith.constant 2.000000e-01 : f32
    %95 = vector.broadcast %cst_40 : f32 to vector<8x128xf32>
    %96 = arith.mulf %95, %75 : vector<8x128xf32>
    %cst_41 = arith.constant 1.000000e+00 : f32
    %97 = vector.broadcast %cst_41 : f32 to vector<8x128xf32>
    %98 = arith.subf %97, %79 : vector<8x128xf32>
    %99 = arith.mulf %96, %98 : vector<8x128xf32>
    %100 = arith.addf %99, %94 : vector<8x128xf32>
    %cst_42 = arith.constant 5.000000e-01 : f32
    %101 = vector.broadcast %cst_42 : f32 to vector<8x128xf32>
    %102 = arith.cmpf ogt, %100, %101 : vector<8x128xf32>
    %103 = arith.extui %102 : vector<8x128xi1> to vector<8x128xi32>
    %104 = arith.sitofp %103 : vector<8x128xi32> to vector<8x128xf32>
    %cst_43 = arith.constant dense<0.000000e+00> : vector<8x128xf32>
    %105 = tpu.matmul %12, %104, %cst_43 {dimension_numbers = #tpu.dot_dimension_numbers<[1], [0], [0], [1], [0, 0, 1, 1], [], []>} : vector<8x8xf32>, vector<8x128xf32>, vector<8x128xf32> -> vector<8x128xf32>
    %c4_i32_44 = arith.constant 4 : i32
    %106 = arith.muli %c3_i32, %c4_i32_44 : i32
    %107 = tpu.assume_multiple %106, 4 : i32
    %108 = vector.extract_strided_slice %105 {offsets = [0, 0], sizes = [4, 128], strides = [1, 1]} : vector<8x128xf32> to vector<4x128xf32>
    %109 = arith.addf %108, %11 : vector<4x128xf32>
    %110 = arith.index_cast %107 : i32 to index
    %c0_45 = arith.constant 0 : index
    %111 = vector.load %arg10[%110, %c0_45] : memref<32x128xf32, #tpu.memory_space<vmem>>, vector<4x128xf32>
    tpu.vector_store %arg10[%110, %c0_45], %109 {strides = array<i32>} : memref<32x128xf32, #tpu.memory_space<vmem>>, vector<4x128xf32>,
    %112 = vector.extract_strided_slice %105 {offsets = [4, 0], sizes = [4, 128], strides = [1, 1]} : vector<8x128xf32> to vector<4x128xf32>
    %113 = arith.index_cast %107 : i32 to index
    %c0_46 = arith.constant 0 : index
    %114 = vector.load %arg11[%113, %c0_46] : memref<32x128xf32, #tpu.memory_space<vmem>>, vector<4x128xf32>
    tpu.vector_store %arg11[%113, %c0_46], %112 {strides = array<i32>} : memref<32x128xf32, #tpu.memory_space<vmem>>, vector<4x128xf32>,
    %c4_i32_47 = arith.constant 4 : i32
    %115 = arith.index_cast %c4_i32_47 : i32 to index
    %c0_48 = arith.constant 0 : index
    %c0_49 = arith.constant 0 : index
    %116 = vector.load %arg1[%115, %c0_48, %c0_49] : memref<8x8x128xf32, #tpu.memory_space<vmem>>, vector<1x8x128xf32>
    %117 = vector.shape_cast %116 : vector<1x8x128xf32> to vector<8x128xf32>
    %118 = arith.mulf %5, %117 : vector<8x128xf32>
    %119 = arith.addf %118, %8 : vector<8x128xf32>
    %cst_50 = arith.constant 2.000000e-01 : f32
    %120 = vector.broadcast %cst_50 : f32 to vector<8x128xf32>
    %121 = arith.mulf %120, %100 : vector<8x128xf32>
    %cst_51 = arith.constant 1.000000e+00 : f32
    %122 = vector.broadcast %cst_51 : f32 to vector<8x128xf32>
    %123 = arith.subf %122, %104 : vector<8x128xf32>
    %124 = arith.mulf %121, %123 : vector<8x128xf32>
    %125 = arith.addf %124, %119 : vector<8x128xf32>
    %cst_52 = arith.constant 5.000000e-01 : f32
    %126 = vector.broadcast %cst_52 : f32 to vector<8x128xf32>
    %127 = arith.cmpf ogt, %125, %126 : vector<8x128xf32>
    %128 = arith.extui %127 : vector<8x128xi1> to vector<8x128xi32>
    %129 = arith.sitofp %128 : vector<8x128xi32> to vector<8x128xf32>
    %cst_53 = arith.constant dense<0.000000e+00> : vector<8x128xf32>
    %130 = tpu.matmul %12, %129, %cst_53 {dimension_numbers = #tpu.dot_dimension_numbers<[1], [0], [0], [1], [0, 0, 1, 1], [], []>} : vector<8x8xf32>, vector<8x128xf32>, vector<8x128xf32> -> vector<8x128xf32>
    %c4_i32_54 = arith.constant 4 : i32
    %131 = arith.muli %c4_i32_47, %c4_i32_54 : i32
    %132 = tpu.assume_multiple %131, 4 : i32
    %133 = vector.extract_strided_slice %130 {offsets = [0, 0], sizes = [4, 128], strides = [1, 1]} : vector<8x128xf32> to vector<4x128xf32>
    %134 = arith.addf %133, %11 : vector<4x128xf32>
    %135 = arith.index_cast %132 : i32 to index
    %c0_55 = arith.constant 0 : index
    %136 = vector.load %arg10[%135, %c0_55] : memref<32x128xf32, #tpu.memory_space<vmem>>, vector<4x128xf32>
    tpu.vector_store %arg10[%135, %c0_55], %134 {strides = array<i32>} : memref<32x128xf32, #tpu.memory_space<vmem>>, vector<4x128xf32>,
    %137 = vector.extract_strided_slice %130 {offsets = [4, 0], sizes = [4, 128], strides = [1, 1]} : vector<8x128xf32> to vector<4x128xf32>
    %138 = arith.index_cast %132 : i32 to index
    %c0_56 = arith.constant 0 : index
    %139 = vector.load %arg11[%138, %c0_56] : memref<32x128xf32, #tpu.memory_space<vmem>>, vector<4x128xf32>
    tpu.vector_store %arg11[%138, %c0_56], %137 {strides = array<i32>} : memref<32x128xf32, #tpu.memory_space<vmem>>, vector<4x128xf32>,
    %c5_i32 = arith.constant 5 : i32
    %140 = arith.index_cast %c5_i32 : i32 to index
    %c0_57 = arith.constant 0 : index
    %c0_58 = arith.constant 0 : index
    %141 = vector.load %arg1[%140, %c0_57, %c0_58] : memref<8x8x128xf32, #tpu.memory_space<vmem>>, vector<1x8x128xf32>
    %142 = vector.shape_cast %141 : vector<1x8x128xf32> to vector<8x128xf32>
    %143 = arith.mulf %5, %142 : vector<8x128xf32>
    %144 = arith.addf %143, %8 : vector<8x128xf32>
    %cst_59 = arith.constant 2.000000e-01 : f32
    %145 = vector.broadcast %cst_59 : f32 to vector<8x128xf32>
    %146 = arith.mulf %145, %125 : vector<8x128xf32>
    %cst_60 = arith.constant 1.000000e+00 : f32
    %147 = vector.broadcast %cst_60 : f32 to vector<8x128xf32>
    %148 = arith.subf %147, %129 : vector<8x128xf32>
    %149 = arith.mulf %146, %148 : vector<8x128xf32>
    %150 = arith.addf %149, %144 : vector<8x128xf32>
    %cst_61 = arith.constant 5.000000e-01 : f32
    %151 = vector.broadcast %cst_61 : f32 to vector<8x128xf32>
    %152 = arith.cmpf ogt, %150, %151 : vector<8x128xf32>
    %153 = arith.extui %152 : vector<8x128xi1> to vector<8x128xi32>
    %154 = arith.sitofp %153 : vector<8x128xi32> to vector<8x128xf32>
    %cst_62 = arith.constant dense<0.000000e+00> : vector<8x128xf32>
    %155 = tpu.matmul %12, %154, %cst_62 {dimension_numbers = #tpu.dot_dimension_numbers<[1], [0], [0], [1], [0, 0, 1, 1], [], []>} : vector<8x8xf32>, vector<8x128xf32>, vector<8x128xf32> -> vector<8x128xf32>
    %c4_i32_63 = arith.constant 4 : i32
    %156 = arith.muli %c5_i32, %c4_i32_63 : i32
    %157 = tpu.assume_multiple %156, 4 : i32
    %158 = vector.extract_strided_slice %155 {offsets = [0, 0], sizes = [4, 128], strides = [1, 1]} : vector<8x128xf32> to vector<4x128xf32>
    %159 = arith.addf %158, %11 : vector<4x128xf32>
    %160 = arith.index_cast %157 : i32 to index
    %c0_64 = arith.constant 0 : index
    %161 = vector.load %arg10[%160, %c0_64] : memref<32x128xf32, #tpu.memory_space<vmem>>, vector<4x128xf32>
    tpu.vector_store %arg10[%160, %c0_64], %159 {strides = array<i32>} : memref<32x128xf32, #tpu.memory_space<vmem>>, vector<4x128xf32>,
    %162 = vector.extract_strided_slice %155 {offsets = [4, 0], sizes = [4, 128], strides = [1, 1]} : vector<8x128xf32> to vector<4x128xf32>
    %163 = arith.index_cast %157 : i32 to index
    %c0_65 = arith.constant 0 : index
    %164 = vector.load %arg11[%163, %c0_65] : memref<32x128xf32, #tpu.memory_space<vmem>>, vector<4x128xf32>
    tpu.vector_store %arg11[%163, %c0_65], %162 {strides = array<i32>} : memref<32x128xf32, #tpu.memory_space<vmem>>, vector<4x128xf32>,
    %c6_i32 = arith.constant 6 : i32
    %165 = arith.index_cast %c6_i32 : i32 to index
    %c0_66 = arith.constant 0 : index
    %c0_67 = arith.constant 0 : index
    %166 = vector.load %arg1[%165, %c0_66, %c0_67] : memref<8x8x128xf32, #tpu.memory_space<vmem>>, vector<1x8x128xf32>
    %167 = vector.shape_cast %166 : vector<1x8x128xf32> to vector<8x128xf32>
    %168 = arith.mulf %5, %167 : vector<8x128xf32>
    %169 = arith.addf %168, %8 : vector<8x128xf32>
    %cst_68 = arith.constant 2.000000e-01 : f32
    %170 = vector.broadcast %cst_68 : f32 to vector<8x128xf32>
    %171 = arith.mulf %170, %150 : vector<8x128xf32>
    %cst_69 = arith.constant 1.000000e+00 : f32
    %172 = vector.broadcast %cst_69 : f32 to vector<8x128xf32>
    %173 = arith.subf %172, %154 : vector<8x128xf32>
    %174 = arith.mulf %171, %173 : vector<8x128xf32>
    %175 = arith.addf %174, %169 : vector<8x128xf32>
    %cst_70 = arith.constant 5.000000e-01 : f32
    %176 = vector.broadcast %cst_70 : f32 to vector<8x128xf32>
    %177 = arith.cmpf ogt, %175, %176 : vector<8x128xf32>
    %178 = arith.extui %177 : vector<8x128xi1> to vector<8x128xi32>
    %179 = arith.sitofp %178 : vector<8x128xi32> to vector<8x128xf32>
    %cst_71 = arith.constant dense<0.000000e+00> : vector<8x128xf32>
    %180 = tpu.matmul %12, %179, %cst_71 {dimension_numbers = #tpu.dot_dimension_numbers<[1], [0], [0], [1], [0, 0, 1, 1], [], []>} : vector<8x8xf32>, vector<8x128xf32>, vector<8x128xf32> -> vector<8x128xf32>
    %c4_i32_72 = arith.constant 4 : i32
    %181 = arith.muli %c6_i32, %c4_i32_72 : i32
    %182 = tpu.assume_multiple %181, 4 : i32
    %183 = vector.extract_strided_slice %180 {offsets = [0, 0], sizes = [4, 128], strides = [1, 1]} : vector<8x128xf32> to vector<4x128xf32>
    %184 = arith.addf %183, %11 : vector<4x128xf32>
    %185 = arith.index_cast %182 : i32 to index
    %c0_73 = arith.constant 0 : index
    %186 = vector.load %arg10[%185, %c0_73] : memref<32x128xf32, #tpu.memory_space<vmem>>, vector<4x128xf32>
    tpu.vector_store %arg10[%185, %c0_73], %184 {strides = array<i32>} : memref<32x128xf32, #tpu.memory_space<vmem>>, vector<4x128xf32>,
    %187 = vector.extract_strided_slice %180 {offsets = [4, 0], sizes = [4, 128], strides = [1, 1]} : vector<8x128xf32> to vector<4x128xf32>
    %188 = arith.index_cast %182 : i32 to index
    %c0_74 = arith.constant 0 : index
    %189 = vector.load %arg11[%188, %c0_74] : memref<32x128xf32, #tpu.memory_space<vmem>>, vector<4x128xf32>
    tpu.vector_store %arg11[%188, %c0_74], %187 {strides = array<i32>} : memref<32x128xf32, #tpu.memory_space<vmem>>, vector<4x128xf32>,
    %c7_i32 = arith.constant 7 : i32
    %190 = arith.index_cast %c7_i32 : i32 to index
    %c0_75 = arith.constant 0 : index
    %c0_76 = arith.constant 0 : index
    %191 = vector.load %arg1[%190, %c0_75, %c0_76] : memref<8x8x128xf32, #tpu.memory_space<vmem>>, vector<1x8x128xf32>
    %192 = vector.shape_cast %191 : vector<1x8x128xf32> to vector<8x128xf32>
    %193 = arith.mulf %5, %192 : vector<8x128xf32>
    %194 = arith.addf %193, %8 : vector<8x128xf32>
    %cst_77 = arith.constant 2.000000e-01 : f32
    %195 = vector.broadcast %cst_77 : f32 to vector<8x128xf32>
    %196 = arith.mulf %195, %175 : vector<8x128xf32>
    %cst_78 = arith.constant 1.000000e+00 : f32
    %197 = vector.broadcast %cst_78 : f32 to vector<8x128xf32>
    %198 = arith.subf %197, %179 : vector<8x128xf32>
    %199 = arith.mulf %196, %198 : vector<8x128xf32>
    %200 = arith.addf %199, %194 : vector<8x128xf32>
    %cst_79 = arith.constant 5.000000e-01 : f32
    %201 = vector.broadcast %cst_79 : f32 to vector<8x128xf32>
    %202 = arith.cmpf ogt, %200, %201 : vector<8x128xf32>
    %203 = arith.extui %202 : vector<8x128xi1> to vector<8x128xi32>
    %204 = arith.sitofp %203 : vector<8x128xi32> to vector<8x128xf32>
    %cst_80 = arith.constant dense<0.000000e+00> : vector<8x128xf32>
    %205 = tpu.matmul %12, %204, %cst_80 {dimension_numbers = #tpu.dot_dimension_numbers<[1], [0], [0], [1], [0, 0, 1, 1], [], []>} : vector<8x8xf32>, vector<8x128xf32>, vector<8x128xf32> -> vector<8x128xf32>
    %c4_i32_81 = arith.constant 4 : i32
    %206 = arith.muli %c7_i32, %c4_i32_81 : i32
    %207 = tpu.assume_multiple %206, 4 : i32
    %208 = vector.extract_strided_slice %205 {offsets = [0, 0], sizes = [4, 128], strides = [1, 1]} : vector<8x128xf32> to vector<4x128xf32>
    %209 = arith.addf %208, %11 : vector<4x128xf32>
    %210 = arith.index_cast %207 : i32 to index
    %c0_82 = arith.constant 0 : index
    %211 = vector.load %arg10[%210, %c0_82] : memref<32x128xf32, #tpu.memory_space<vmem>>, vector<4x128xf32>
    tpu.vector_store %arg10[%210, %c0_82], %209 {strides = array<i32>} : memref<32x128xf32, #tpu.memory_space<vmem>>, vector<4x128xf32>,
    %212 = vector.extract_strided_slice %205 {offsets = [4, 0], sizes = [4, 128], strides = [1, 1]} : vector<8x128xf32> to vector<4x128xf32>
    %213 = arith.index_cast %207 : i32 to index
    %c0_83 = arith.constant 0 : index
    %214 = vector.load %arg11[%213, %c0_83] : memref<32x128xf32, #tpu.memory_space<vmem>>, vector<4x128xf32>
    tpu.vector_store %arg11[%213, %c0_83], %212 {strides = array<i32>} : memref<32x128xf32, #tpu.memory_space<vmem>>, vector<4x128xf32>,
    %c8_i32 = arith.constant 8 : i32
    %c0_84 = arith.constant 0 : index
    %c0_85 = arith.constant 0 : index
    %215 = vector.load %arg8[%c0_84, %c0_85] : memref<8x128xf32, #tpu.memory_space<vmem>>, vector<8x128xf32>
    tpu.vector_store %arg8[%c0_84, %c0_85], %200 {strides = array<i32>} : memref<8x128xf32, #tpu.memory_space<vmem>>, vector<8x128xf32>,
    %c0_86 = arith.constant 0 : index
    %c0_87 = arith.constant 0 : index
    %216 = vector.load %arg9[%c0_86, %c0_87] : memref<8x128xf32, #tpu.memory_space<vmem>>, vector<8x128xf32>
    tpu.vector_store %arg9[%c0_86, %c0_87], %204 {strides = array<i32>} : memref<8x128xf32, #tpu.memory_space<vmem>>, vector<8x128xf32>,
    %c0_88 = arith.constant 0 : index
    %c0_89 = arith.constant 0 : index
    %217 = vector.load %arg11[%c0_88, %c0_89] : memref<32x128xf32, #tpu.memory_space<vmem>>, vector<32x128xf32>
    %c0_90 = arith.constant 0 : index
    %c0_91 = arith.constant 0 : index
    %218 = vector.load %arg2[%c0_90, %c0_91] : memref<128x128xf32, #tpu.memory_space<vmem>>, vector<128x128xf32>
    %cst_92 = arith.constant dense<0.000000e+00> : vector<32x128xf32>
    %219 = tpu.matmul %217, %218, %cst_92 {dimension_numbers = #tpu.dot_dimension_numbers<[1], [0], [0], [1], [0, 0, 1, 1], [], []>} : vector<32x128xf32>, vector<128x128xf32>, vector<32x128xf32> -> vector<32x128xf32>
    %c0_93 = arith.constant 0 : index
    %c0_94 = arith.constant 0 : index
    %220 = vector.load %arg10[%c0_93, %c0_94] : memref<32x128xf32, #tpu.memory_space<vmem>>, vector<32x128xf32>
    %221 = arith.addf %220, %219 : vector<32x128xf32>
    %c0_95 = arith.constant 0 : index
    %c0_96 = arith.constant 0 : index
    %222 = vector.load %arg7[%c0_95, %c0_96] : memref<32x128xf32, #tpu.memory_space<vmem>>, vector<32x128xf32>
    tpu.vector_store %arg7[%c0_95, %c0_96], %221 {strides = array<i32>} : memref<32x128xf32, #tpu.memory_space<vmem>>, vector<32x128xf32>,
    return
  }
  func.func @transform_0(%arg0: i32) -> (i32, i32, i32) {
    %c0_i32 = arith.constant 0 : i32
    %c0_i32_0 = arith.constant 0 : i32
    %c0_i32_1 = arith.constant 0 : i32
    return %arg0, %c0_i32, %c0_i32_0 : i32, i32, i32
  }
  func.func @transform_1(%arg0: i32) -> (i32, i32) {
    %c0_i32 = arith.constant 0 : i32
    %c0_i32_0 = arith.constant 0 : i32
    %c0_i32_1 = arith.constant 0 : i32
    return %c0_i32, %c0_i32_0 : i32, i32
  }
  func.func @transform_2(%arg0: i32) -> (i32, i32) {
    %c0_i32 = arith.constant 0 : i32
    %c0_i32_0 = arith.constant 0 : i32
    %c0_i32_1 = arith.constant 0 : i32
    return %c0_i32, %c0_i32_0 : i32, i32
  }
  func.func @transform_3(%arg0: i32) -> (i32, i32) {
    %c0_i32 = arith.constant 0 : i32
    %c0_i32_0 = arith.constant 0 : i32
    %c0_i32_1 = arith.constant 0 : i32
    return %c0_i32, %c0_i32_0 : i32, i32
  }
  func.func @transform_4(%arg0: i32) -> (i32, i32) {
    %c0_i32 = arith.constant 0 : i32
    %c0_i32_0 = arith.constant 0 : i32
    %c0_i32_1 = arith.constant 0 : i32
    return %c0_i32, %c0_i32_0 : i32, i32
  }
  func.func @transform_5(%arg0: i32) -> (i32, i32) {
    %c0_i32 = arith.constant 0 : i32
    %c0_i32_0 = arith.constant 0 : i32
    %c0_i32_1 = arith.constant 0 : i32
    return %c0_i32, %c0_i32_0 : i32, i32
  }
  func.func @transform_6(%arg0: i32) -> (i32, i32) {
    %c0_i32 = arith.constant 0 : i32
    %c0_i32_0 = arith.constant 0 : i32
    return %arg0, %c0_i32 : i32, i32
  }
}

</mosaic_0001>

<bundles_post_ra>
// kernel: tpu_custom_call.1
= control target key start
LH: loop header
LB: loop body
LE: loop exit
PB: predicated region body
PF: predicated region fallthrough
CT: control target
= control target key end

     0   :  { %11 = vsyncpa [#allocation7], 0  ;;  %s1336_s0 = inlined_call_operand.hbm [shape: f32[8,8,128], index: 0, kind: input, shape index: {}]   ;;  %s1337_s1 = inlined_call_operand.hbm [shape: f32[128,128], index: 1, kind: input, shape index: {}]   ;;  %s1338_s2 = inlined_call_operand.vmem [shape: f32[8,8], index: 2, kind: input, shape index: {}]   ;;  %s1339_s3 = inlined_call_operand.vmem [shape: f32[8,1], index: 3, kind: input, shape index: {}]   ;;  %s1340_s4 = inlined_call_operand.vmem [shape: f32[8,1], index: 4, kind: input, shape index: {}]   ;;  %s1341_s5 = inlined_call_operand.vmem [shape: f32[4,1], index: 5, kind: input, shape index: {}]   ;;  %s1342_s6 = inlined_call_operand.hbm [shape: f32[32,128], index: 6, kind: output, shape index: {}]  }
   0x1   :  { %12 = vsyncpa [#allocation10], 0 }
   0x2   :  { %13 = vsyncpa [#allocation8], 0  ;;  %s1158_s21 = smov [#allocation6]   ;;  %s1086_s25 = scalar_lea.hbm %s1336_s0, 1024 }
   0x3   :  { %s19_s22 = sshll.u32 %s1158_s21, 4  ;;  %p1087_p0 = scmp.ne.s32.totalorder %s1336_s0, %s1086_s25  ;;  %s20_s22 = int_to_ptr.vmem [resolvable:$true] %s19_s22 }
   0x4   :  { %p1090_p1 = scmp.lt.u32.totalorder %s1086_s25, %s1336_s0 }
   0x6   :  { %p1092_p2 = pnand %p1090_p1, %p1087_p0 }
   0x8   :  { %1095 = shalt.err (!%p1092_p2)
}
   0x9   :  { %s1096_s30 = scalar_lea.vmem %s20_s22, 1024  ;;  %p1101_p4 = scmp.lt.s32.totalorder %s20_s22, %s20_s22 }
   0xa   :  { %p1097_p3 = scmp.ne.s32.totalorder %s20_s22, %s1096_s30  ;;  %p1102_p5 = scmp.lt.s32.totalorder %s1096_s30, %s1096_s30 }
   0xc   :  { %p1103_p6 = por %p1102_p5, %p1101_p4 }
   0xe   :  { %p1104_p7 = pnand %p1103_p6, %p1097_p3 }
  0x10   :  { %1107 = shalt.err (!%p1104_p7)
}
  0x11   :  { %s1159_s7 = smov 128   ;;  %s1160_s8 = smov 8  }
  0x12   :  { %25 = dma.hbm_to_vmem [thread:$0]  %s1336_s0, 1024, %s20_s22, [#allocation7], %s1159_s7, %s1159_s7, %s1160_s8  }
  0x13   :  { %s1161_s11 = smov [#allocation9]   ;;  %s1108_s15 = scalar_lea.hbm %s1337_s1, 2048 }
  0x14   :  { %s31_s12 = sshll.u32 %s1161_s11, 4  ;;  %p1109_p8 = scmp.ne.s32.totalorder %s1337_s1, %s1108_s15  ;;  %s32_s12 = int_to_ptr.vmem [resolvable:$true] %s31_s12 }
  0x15   :  { %p1112_p9 = scmp.lt.u32.totalorder %s1108_s15, %s1337_s1 }
  0x17   :  { %p1114_p10 = pnand %p1112_p9, %p1109_p8 }
  0x19   :  { %1117 = shalt.err (!%p1114_p10)
}
  0x1a   :  { %s1118_s20 = scalar_lea.vmem %s32_s12, 2048  ;;  %p1123_p12 = scmp.lt.s32.totalorder %s32_s12, %s32_s12 }
  0x1b   :  { %p1119_p11 = scmp.ne.s32.totalorder %s32_s12, %s1118_s20  ;;  %p1124_p13 = scmp.lt.s32.totalorder %s1118_s20, %s1118_s20 }
  0x1d   :  { %p1125_p0 = por %p1124_p13, %p1123_p12 }
  0x1f   :  { %p1126_p1 = pnand %p1125_p0, %p1119_p11 }
  0x21   :  { %1129 = shalt.err (!%p1126_p1)
}
  0x22   :  { %37 = dma.hbm_to_vmem [thread:$0]  %s1337_s1, 2048, %s32_s12, [#allocation10], %s1159_s7, %s1159_s7, %s1160_s8  }
  0x23   :  { %1152 = dma.done.wait [#allocation7], 1024  }
  0x24   :  { %1153 = vsyncadd [#allocation7], 4294966272 }
  0x25   :  { %1154 = dma.done.wait [#allocation10], 2048  }
  0x26   :  { %1155 = vsyncadd [#allocation10], 4294965248  ;;  %v1162_v0 = vmov 0   ;;  %v58_v1 = vld [vmem:[%s1339_s3] sm:$0xff]  ;;  %v1163_v3 = vmov 0.0   ;;  %vm1164_vm0 = vmmov 0  }
  0x27   :  { %1084 = vset.pattern.permute.xlu0 %v1162_v0  ;;  %1085 = vset.pattern.permute.xlu1 %v1162_v0  ;;  %v64_v2 = vld [vmem:[%s1340_s4] sm:$0xff]  ;;  %v775_v6 = vld [vmem:[#allocation9 + $0x8] sm:$0xff]  ;;  %v776_v8 = vld [vmem:[#allocation9 + $0x10] sm:$0xff]  ;;  %vm89_vm1 = vcmask 64512   ;;  %v1165_v28 = vmov 1.0  }
  0x28   :  { %61 = vperm.xlu0 %1084, %v58_v1   ;;  %965 = vmatprep.subr.mxu1 %v1163_v3  ;;  %v70_v4 = vld [vmem:[%s1341_s5] sm:$0xf]  ;;  %v777_v9 = vld [vmem:[#allocation9 + $0x18] sm:$0xff]  ;;  %v779_v12 = vld [vmem:[#allocation9 + $0x28] sm:$0xff] }
  0x29   :  { %967 = vmatprep.mubr.msk.f32.mxu1 %vm1164_vm0, %v1163_v3  ;;  %v774_v5 = vld [vmem:[#allocation9] sm:$0xff]  ;;  %73 = vperm.xlu1 %1085, %v70_v4   ;;  %v1047_v10 = vpack.c.bf16 %v777_v9, %v776_v8  ;;  %v780_v14 = vld [vmem:[#allocation9 + $0x30] sm:$0xff]  ;;  %v781_v15 = vld [vmem:[#allocation9 + $0x38] sm:$0xff] }
  0x2a   :  { %v1043_v7 = vpack.c.bf16 %v775_v6, %v774_v5  ;;  %v778_v11 = vld [vmem:[#allocation9 + $0x20] sm:$0xff]  ;;  %v1055_v16 = vpack.c.bf16 %v781_v15, %v780_v14  ;;  %v783_v18 = vld [vmem:[#allocation9 + $0x48] sm:$0xff]  ;;  %v253_v35 = vld [vmem:[#allocation6 + $0x10] sm:$0xff] }
  0x2b   :  { %v1051_v13 = vpack.c.bf16 %v779_v12, %v778_v11  ;;  %v782_v17 = vld [vmem:[#allocation9 + $0x40] sm:$0xff]  ;;  %v167_v25 = vld [vmem:[#allocation6 + $0x8] sm:$0xff]  ;;  %v339_v43 = vld [vmem:[#allocation6 + $0x18] sm:$0xff] }
  0x2c   :  { %67 = vperm.xlu0 %1084, %v64_v2   ;;  %1044 = vmatprep.subr.bf16.mxu0 %v1043_v7  ;;  %v1059_v19 = vpack.c.bf16 %v783_v18, %v782_v17  ;;  %v79_v21 = vld [vmem:[#allocation6] sm:$0xff]  ;;  %v511_v59 = vld [vmem:[#allocation6 + $0x28] sm:$0xff]  ;;  %v597_v4 = vld [vmem:[#allocation6 + $0x30] sm:$0xff] }
  0x2d   :  { %1046 = vmatpush3.bf16.msra.mxu0 %v1043_v7  ;;  %v1253_v26 = vld [vmem:[%s1338_s2] sm:$0xff]  ;;  %v683_v12 = vld [vmem:[#allocation6 + $0x38] sm:$0xff]  ;;  %s1166_s2 = smov [#allocation11]  }
  0x2e   :  { %1048 = vmatprep.subr.bf16.mxu0 %v1047_v10  ;;  %v425_v51 = vld [vmem:[#allocation6 + $0x20] sm:$0xff]  ;;  %s892_s5 = sshll.u32 %s1166_s2, 4  ;;  %s893_s5 = int_to_ptr.vmem [resolvable:$true] %s892_s5 }
  0x2f   :  { %s1130_s27 = scalar_lea.vmem %s893_s5, 512  ;;  %p1135_p3 = scmp.lt.s32.totalorder %s893_s5, %s893_s5 }
  0x30   :  { %p1131_p2 = scmp.ne.s32.totalorder %s893_s5, %s1130_s27  ;;  %p1136_p4 = scmp.lt.s32.totalorder %s1130_s27, %s1130_s27 }
  0x31   :  { %1050 = vmatpush3.bf16.msra.mxu0 %v1047_v10 }
  0x32   :  { %1052 = vmatprep.subr.bf16.mxu0 %v1051_v13  ;;  %p1137_p5 = por %p1136_p4, %p1135_p3 }
  0x34   :  { %p1138_p6 = pnand %p1137_p5, %p1131_p2 }
  0x35   :  { %1054 = vmatpush3.bf16.msra.mxu0 %v1051_v13 }
  0x36   :  { %1056 = vmatprep.subr.bf16.mxu0 %v1055_v16 }
  0x39   :  { %1058 = vmatpush3.bf16.msra.mxu0 %v1055_v16 }
  0x3a   :  { %1060 = vmatprep.subr.bf16.mxu0 %v1059_v19 }
  0x3d   :  { %1062 = vmatpush3.bf16.msra.mxu0 %v1059_v19 }
  0xa7   :  { %v1244_v20 = vpop.permute.xlu0 %61 }
  0xa8   :  { %v80_v22 = vmul.f32 %v79_v21, %v1244_v20  ;;  %v168_v29 = vmul.f32 %v167_v25, %v1244_v20  ;;  %v254_v39 = vmul.f32 %v253_v35, %v1244_v20  ;;  %v340_v47 = vmul.f32 %v339_v43, %v1244_v20  ;;  %v784_v21 = vld [vmem:[#allocation9 + $0x50] sm:$0xff]  ;;  %v786_v25 = vld [vmem:[#allocation9 + $0x60] sm:$0xff] }
  0xa9   :  { %v426_v55 = vmul.f32 %v425_v51, %v1244_v20  ;;  %v512_v63 = vmul.f32 %v511_v59, %v1244_v20  ;;  %v598_v8 = vmul.f32 %v597_v4, %v1244_v20  ;;  %v684_v16 = vmul.f32 %v683_v12, %v1244_v20  ;;  %v787_v20 = vld [vmem:[#allocation9 + $0x68] sm:$0xff] }
  0xab   :  { %v1247_v23 = vpop.permute.xlu0 %67 }
  0xac   :  { %v81_v24 = vadd.f32 %v80_v22, %v1247_v23  ;;  %v169_v32 = vadd.f32 %v168_v29, %v1247_v23  ;;  %v255_v41 = vadd.f32 %v254_v39, %v1247_v23  ;;  %v341_v49 = vadd.f32 %v340_v47, %v1247_v23  ;;  %v785_v22 = vld [vmem:[#allocation9 + $0x58] sm:$0xff]  ;;  %v788_v29 = vld [vmem:[#allocation9 + $0x70] sm:$0xff] }
  0xad   :  { %v427_v57 = vadd.f32 %v426_v55, %v1247_v23  ;;  %v513_v1 = vadd.f32 %v512_v63, %v1247_v23  ;;  %v599_v10 = vadd.f32 %v598_v8, %v1247_v23  ;;  %v685_v17 = vadd.f32 %v684_v16, %v1247_v23 }
  0xae   :  { %vm86_vm2 = vcmp.gt.f32.partialorder %v81_v24, 0.5  ;;  %v170_v30 = vmul.f32 0.2, %v81_v24  ;;  %v1063_v24 = vpack.c.bf16 %v785_v22, %v784_v21 }
  0xaf   :  { %v905_v27 = vsel %vm86_vm2, 1.0, %v1163_v3  ;;  %966 = vmatpush3.msk.msra.mxu1 %vm86_vm2, %v1165_v28 }
  0xb0   :  { %v171_v31 = vsub.f32 1.0, %v905_v27  ;;  %970 = vmatprep.subr.mxu1 %v1163_v3  ;;  %968 = vmatmul.mubr.msk.f32.vlgmr.msra.gmra.mrb[0].mxu1 %vm89_vm1, %v1253_v26  ;;  %v1067_v27 = vpack.c.bf16 %v787_v20, %v786_v25 }
  0xb1   :  { %972 = vmatprep.mubr.msk.f32.mxu1 %vm1164_vm0, %v1163_v3  ;;  %1064 = vmatprep.subr.bf16.mxu0 %v1063_v24 }
  0xb2   :  { %v172_v33 = vmul.f32 %v171_v31, %v170_v30  ;;  %1066 = vmatpush3.bf16.msra.mxu0 %v1063_v24  ;;  %v74_v30 = vpop.permute.xlu1 %73 }
  0xb3   :  { %1068 = vmatprep.subr.bf16.mxu0 %v1067_v27 }
  0xb4   :  { %v173_v34 = vadd.f32 %v172_v33, %v169_v32 }
  0xb6   :  { %vm174_vm3 = vcmp.gt.f32.partialorder %v173_v34, 0.5  ;;  %v256_v37 = vmul.f32 0.2, %v173_v34  ;;  %1070 = vmatpush3.bf16.msra.mxu0 %v1067_v27 }
  0xb7   :  { %v908_v36 = vsel %vm174_vm3, 1.0, %v1163_v3  ;;  %971 = vmatpush3.msk.msra.mxu1 %vm174_vm3, %v1165_v28 }
  0xb8   :  { %v257_v38 = vsub.f32 1.0, %v908_v36  ;;  %975 = vmatprep.subr.mxu1 %v1163_v3  ;;  %973 = vmatmul.mubr.msk.f32.vlgmr.msra.gmra.mrb[2].mxu1 %vm89_vm1, %v1253_v26 }
  0xb9   :  { %977 = vmatprep.mubr.msk.f32.mxu1 %vm1164_vm0, %v1163_v3 }
  0xba   :  { %v258_v40 = vmul.f32 %v257_v38, %v256_v37 }
  0xbc   :  { %v259_v42 = vadd.f32 %v258_v40, %v255_v41 }
  0xbe   :  { %vm260_vm4 = vcmp.gt.f32.partialorder %v259_v42, 0.5  ;;  %v342_v45 = vmul.f32 0.2, %v259_v42 }
  0xbf   :  { %v911_v44 = vsel %vm260_vm4, 1.0, %v1163_v3  ;;  %976 = vmatpush3.msk.msra.mxu1 %vm260_vm4, %v1165_v28 }
  0xc0   :  { %v343_v46 = vsub.f32 1.0, %v911_v44  ;;  %978 = vmatmul.mubr.msk.f32.vlgmr.msra.gmra.mrb[4].mxu1 %vm89_vm1, %v1253_v26  ;;  %980 = vmatprep.subr.mxu1 %v1163_v3 }
  0xc1   :  { %982 = vmatprep.mubr.msk.f32.mxu1 %vm1164_vm0, %v1163_v3 }
  0xc2   :  { %v344_v48 = vmul.f32 %v343_v46, %v342_v45 }
  0xc4   :  { %v345_v50 = vadd.f32 %v344_v48, %v341_v49 }
  0xc6   :  { %vm346_vm5 = vcmp.gt.f32.partialorder %v345_v50, 0.5  ;;  %v428_v53 = vmul.f32 0.2, %v345_v50 }
  0xc7   :  { %v914_v52 = vsel %vm346_vm5, 1.0, %v1163_v3  ;;  %981 = vmatpush3.msk.msra.mxu1 %vm346_vm5, %v1165_v28 }
  0xc8   :  { %v429_v54 = vsub.f32 1.0, %v914_v52  ;;  %983 = vmatmul.mubr.msk.f32.vlgmr.msra.gmra.mrb[6].mxu1 %vm89_vm1, %v1253_v26  ;;  %985 = vmatprep.subr.mxu1 %v1163_v3 }
  0xc9   :  { %987 = vmatprep.mubr.msk.f32.mxu1 %vm1164_vm0, %v1163_v3 }
  0xca   :  { %v430_v56 = vmul.f32 %v429_v54, %v428_v53 }
  0xcc   :  { %v431_v58 = vadd.f32 %v430_v56, %v427_v57 }
  0xce   :  { %vm432_vm6 = vcmp.gt.f32.partialorder %v431_v58, 0.5  ;;  %v514_v61 = vmul.f32 0.2, %v431_v58 }
  0xcf   :  { %v917_v60 = vsel %vm432_vm6, 1.0, %v1163_v3  ;;  %986 = vmatpush3.msk.msra.mxu1 %vm432_vm6, %v1165_v28 }
  0xd0   :  { %v515_v62 = vsub.f32 1.0, %v917_v60  ;;  %990 = vmatprep.subr.mxu1 %v1163_v3  ;;  %988 = vmatmul.mubr.msk.f32.vlgmr.msra.gmra.mrb[8].mxu1 %vm89_vm1, %v1253_v26 }
  0xd1   :  { %992 = vmatprep.mubr.msk.f32.mxu1 %vm1164_vm0, %v1163_v3 }
  0xd2   :  { %v516_v0 = vmul.f32 %v515_v62, %v514_v61 }
  0xd4   :  { %v517_v2 = vadd.f32 %v516_v0, %v513_v1 }
  0xd6   :  { %vm518_vm7 = vcmp.gt.f32.partialorder %v517_v2, 0.5  ;;  %v600_v6 = vmul.f32 0.2, %v517_v2 }
  0xd7   :  { %v920_v5 = vsel %vm518_vm7, 1.0, %v1163_v3  ;;  %991 = vmatpush3.msk.msra.mxu1 %vm518_vm7, %v1165_v28 }
  0xd8   :  { %v601_v7 = vsub.f32 1.0, %v920_v5  ;;  %995 = vmatprep.subr.mxu1 %v1163_v3  ;;  %993 = vmatmul.mubr.msk.f32.vlgmr.msra.gmra.mrb[10].mxu1 %vm89_vm1, %v1253_v26 }
  0xd9   :  { %997 = vmatprep.mubr.msk.f32.mxu1 %vm1164_vm0, %v1163_v3 }
  0xda   :  { %v602_v9 = vmul.f32 %v601_v7, %v600_v6 }
  0xdc   :  { %v603_v11 = vadd.f32 %v602_v9, %v599_v10 }
  0xde   :  { %vm604_vm8 = vcmp.gt.f32.partialorder %v603_v11, 0.5  ;;  %v686_v14 = vmul.f32 0.2, %v603_v11 }
  0xdf   :  { %v923_v13 = vsel %vm604_vm8, 1.0, %v1163_v3  ;;  %996 = vmatpush3.msk.msra.mxu1 %vm604_vm8, %v1165_v28 }
  0xe0   :  { %v687_v15 = vsub.f32 1.0, %v923_v13  ;;  %998 = vmatmul.mubr.msk.f32.vlgmr.msra.gmra.mrb[12].mxu1 %vm89_vm1, %v1253_v26  ;;  %1000 = vmatprep.subr.mxu1 %v1163_v3 }
  0xe1   :  { %1002 = vmatprep.mubr.msk.f32.mxu1 %vm1164_vm0, %v1163_v3  ;;  %v789_v3 = vld [vmem:[#allocation9 + $0x78] sm:$0xff] }
  0xe2   :  { %v688_v18 = vmul.f32 %v687_v15, %v686_v14  ;;  %v1071_v23 = vpack.c.bf16 %v789_v3, %v788_v29 }
  0xe4   :  { %v689_v19 = vadd.f32 %v688_v18, %v685_v17  ;;  %1072 = vmatprep.subr.bf16.mxu0 %v1071_v23 }
  0xe5   :  { %1074 = vmatpush3.bf16.msra.mxu0 %v1071_v23 }
  0xe6   :  { %vm690_vm9 = vcmp.gt.f32.partialorder %v689_v19, 0.5 }
  0xe7   :  { %1001 = vmatpush3.msk.msra.mxu1 %vm690_vm9, %v1165_v28 }
  0xe8   :  { %1003 = vmatmul.mubr.msk.f32.vlgmr.msra.gmra.mrb[14].mxu1 %vm89_vm1, %v1253_v26 }
 0x183   :  { %v159_v28 = vpop.f32.mrb[0].mxu1 }
 0x184   :  { %165 = vst [vmem:[#allocation5 - $0x4] sm:$0xf0] %v159_v28  ;;  %v969_v31 = vpop.f32.mrb[1].mxu1  ;;  %v163_v26 = vadd.f32 %v159_v28, %v74_v30 }
 0x186   :  { %164 = vst [vmem:[#allocation4] sm:$0xf] %v163_v26 }
 0x18b   :  { %v243_v32 = vpop.f32.mrb[2].mxu1 }
 0x18c   :  { %251 = vst [vmem:[#allocation5] sm:$0xf0] %v243_v32  ;;  %v974_v33 = vpop.f32.mrb[3].mxu1  ;;  %v247_v34 = vadd.f32 %v243_v32, %v74_v30 }
 0x18e   :  { %249 = vst [vmem:[#allocation4 + $0x4] sm:$0xf] %v247_v34 }
 0x193   :  { %v329_v35 = vpop.f32.mrb[4].mxu1  ;;  %v770_v36 = vld [vmem:[#allocation5] sm:$0xff] }
 0x194   :  { %337 = vst [vmem:[#allocation5 + $0x4] sm:$0xf0] %v329_v35  ;;  %v979_v37 = vpop.f32.mrb[5].mxu1  ;;  %v333_v38 = vadd.f32 %v329_v35, %v74_v30  ;;  %1037 = vmatprep.mubr.f32.mxu0 %v770_v36 }
 0x195   :  { %v875_v61 = vld [vmem:[#allocation4] sm:$0xff] }
 0x196   :  { %335 = vst [vmem:[#allocation4 + $0x8] sm:$0xf] %v333_v38 }
 0x19b   :  { %v415_v39 = vpop.f32.mrb[6].mxu1 }
 0x19c   :  { %423 = vst [vmem:[#allocation5 + $0x8] sm:$0xf0] %v415_v39  ;;  %v419_v40 = vadd.f32 %v415_v39, %v74_v30  ;;  %v984_v41 = vpop.f32.mrb[7].mxu1 }
 0x19e   :  { %421 = vst [vmem:[#allocation4 + $0xc] sm:$0xf] %v419_v40 }
 0x1a3   :  { %v771_v42 = vld [vmem:[#allocation5 + $0x8] sm:$0xff]  ;;  %v501_v43 = vpop.f32.mrb[8].mxu1 }
 0x1a4   :  { %1038 = vmatmul.mubr.f32.vlgmr.msra.gmra.mrb[0].mxu0 %v771_v42  ;;  %v505_v44 = vadd.f32 %v501_v43, %v74_v30  ;;  %509 = vst [vmem:[#allocation5 + $0xc] sm:$0xf0] %v501_v43  ;;  %v989_v45 = vpop.f32.mrb[9].mxu1 }
 0x1a5   :  { %v876_v58 = vld [vmem:[#allocation4 + $0x8] sm:$0xff] }
 0x1a6   :  { %507 = vst [vmem:[#allocation4 + $0x10] sm:$0xf] %v505_v44 }
 0x1ab   :  { %v587_v46 = vpop.f32.mrb[10].mxu1 }
 0x1ac   :  { %v591_v47 = vadd.f32 %v587_v46, %v74_v30  ;;  %595 = vst [vmem:[#allocation5 + $0x10] sm:$0xf0] %v587_v46  ;;  %v994_v48 = vpop.f32.mrb[11].mxu1 }
 0x1ae   :  { %593 = vst [vmem:[#allocation4 + $0x14] sm:$0xf] %v591_v47 }
 0x1b3   :  { %v673_v49 = vpop.f32.mrb[12].mxu1  ;;  %v772_v50 = vld [vmem:[#allocation5 + $0x10] sm:$0xff] }
 0x1b4   :  { %v677_v51 = vadd.f32 %v673_v49, %v74_v30  ;;  %681 = vst [vmem:[#allocation5 + $0x14] sm:$0xf0] %v673_v49  ;;  %v999_v52 = vpop.f32.mrb[13].mxu1  ;;  %1040 = vmatprep.mubr.f32.mxu0 %v772_v50 }
 0x1b5   :  { %v877_v4 = vld [vmem:[#allocation4 + $0x10] sm:$0xff] }
 0x1b6   :  { %679 = vst [vmem:[#allocation4 + $0x18] sm:$0xf] %v677_v51 }
 0x1bb   :  { %v759_v53 = vpop.f32.mrb[14].mxu1 }
 0x1bc   :  { %v763_v54 = vadd.f32 %v759_v53, %v74_v30  ;;  %767 = vst [vmem:[#allocation5 + $0x18] sm:$0xf0] %v759_v53  ;;  %v1004_v55 = vpop.f32.mrb[15].mxu1 }
 0x1be   :  { %765 = vst [vmem:[#allocation4 + $0x1c] sm:$0xf] %v763_v54 }
 0x1c3   :  { %v773_v56 = vld [vmem:[#allocation5 + $0x18] sm:$0xff] }
 0x1c4   :  { %1041 = vmatmul.mubr.f32.gmra.mrb[2].mxu0 %v773_v56 }
 0x1c5   :  { %v878_v0 = vld [vmem:[#allocation4 + $0x18] sm:$0xff] }
 0x277   :  { %v1039_v57 = vpop.f32.mrb[0].mxu0 }
 0x278   :  { %v880_v59 = vadd.f32 %v1039_v57, %v876_v58  ;;  %v856_v60 = vpop.f32.mrb[1].mxu0 }
 0x279   :  { %v879_v62 = vadd.f32 %v875_v61, %v856_v60 }
 0x27a   :  { %884 = vst [vmem:[#allocation11 + $0x8] sm:$0xff] %v880_v59 }
 0x27b   :  { %883 = vst [vmem:[#allocation11] sm:$0xff] %v879_v62 }
 0x297   :  { %v1042_v63 = vpop.f32.mrb[2].mxu0 }
 0x298   :  { %v882_v1 = vadd.f32 %v1042_v63, %v878_v0  ;;  %v866_v2 = vpop.f32.mrb[3].mxu0 }
 0x299   :  { %v881_v5 = vadd.f32 %v877_v4, %v866_v2 }
 0x29a   :  { %886 = vst [vmem:[#allocation11 + $0x18] sm:$0xff] %v882_v1 }
 0x29b   :  { %885 = vst [vmem:[#allocation11 + $0x10] sm:$0xff] %v881_v5 }
 0x29c   :  { %1141 = shalt.err (!%p1138_p6)
}
 0x29d   :  { %s1142_s30 = scalar_lea.hbm %s1342_s6, 512 }
 0x29e   :  { %p1143_p7 = scmp.ne.s32.totalorder %s1342_s6, %s1142_s30  ;;  %p1146_p8 = scmp.lt.u32.totalorder %s1142_s30, %s1342_s6 }
 0x2a0   :  { %p1148_p9 = pnand %p1146_p8, %p1143_p7 }
 0x2a2   :  { %1151 = shalt.err (!%p1148_p9)
}
 0x2a3   :  { %898 = dma.vmem_to_hbm [thread:$0]  %s893_s5, 512, %s1342_s6, [#allocation8], %s1159_s7, %s1159_s7, %s1160_s8  }
 0x2a4   :  { %1156 = dma.done.wait [#allocation8], 512  }
 0x2a5   :  { %1157 = vsyncadd [#allocation8], 4294966784 }
 0x2a6   :  { %902 = vsyncpa [#allocation7], 1 }
 0x2a7   :  { %903 = vsyncpa [#allocation10], 1 }
 0x2a8   :  { %904 = vsyncpa [#allocation8], 1 }

</bundles_post_ra>
